<compile_context>
chip_gen: v7x
topology: tpu7x:2x2x1
jax: 0.10.0
libtpu: 0.0.40
codegen_flags: <defaults>
</compile_context>

<pallas_src>
import math

import jax
import jax.numpy as jnp
from jax.experimental import pallas as pl
from jax.experimental.pallas import tpu as pltpu

_BN_EPS = 1e-5
_LANE = 128


def _round_up(x, m):
    return ((x + m - 1) // m) * m


def _bn_and_layer3(t2, w3t, b3, out_pad):
    """Training-mode BatchNorm1d (affine=False) + layer3 Linear+Tanh, packed
    into one lane-dense (B, out_pad) slab: [trans | pred | zero pad]."""
    # Single-pass batch statistics: var = E[t2^2] - E[t2]^2.
    mean = jnp.mean(t2, axis=0, keepdims=True)
    mean_sq = jnp.mean(t2 * t2, axis=0, keepdims=True)
    var = jnp.maximum(mean_sq - mean * mean, 0.0)
    trans = (t2 - mean) * jax.lax.rsqrt(var + _BN_EPS)

    pred = jnp.tanh(
        jnp.dot(trans, w3t, preferred_element_type=jnp.float32) + b3)

    b = trans.shape[0]
    pad = out_pad - trans.shape[1] - pred.shape[1]
    pieces = [trans, pred]
    if pad > 0:
        pieces.append(jnp.zeros((b, pad), jnp.float32))
    return jnp.concatenate(pieces, axis=-1)


def _branch_kernel_with_prev(x_ref, prev_ref, w1t_ref, b1_ref, w2at_ref,
                             w2bt_ref, b2_ref, w3t_ref, b3_ref, out_ref):
    # layer1: Linear + Tanh
    h1 = jnp.tanh(
        jnp.dot(x_ref[...], w1t_ref[...], preferred_element_type=jnp.float32)
        + b1_ref[...])
    # layer2 Linear over concat(h1, previous_out), done as a split matmul.
    z2 = (jnp.dot(h1, w2at_ref[...], preferred_element_type=jnp.float32)
          + jnp.dot(prev_ref[...], w2bt_ref[...],
                    preferred_element_type=jnp.float32)
          + b2_ref[...])
    t2 = jnp.tanh(z2)
    out_ref[...] = _bn_and_layer3(t2, w3t_ref[...], b3_ref[...],
                                  out_ref.shape[-1])


def _branch_kernel_no_prev(x_ref, w1t_ref, b1_ref, w2at_ref, b2_ref,
                           w3t_ref, b3_ref, out_ref):
    h1 = jnp.tanh(
        jnp.dot(x_ref[...], w1t_ref[...], preferred_element_type=jnp.float32)
        + b1_ref[...])
    t2 = jnp.tanh(
        jnp.dot(h1, w2at_ref[...], preferred_element_type=jnp.float32)
        + b2_ref[...])
    out_ref[...] = _bn_and_layer3(t2, w3t_ref[...], b3_ref[...],
                                  out_ref.shape[-1])


def branch_nodes_forward(x, previous_out, params):
    """Run N BranchNodes in one pallas_call.

    x: (N, B, feature_dim); previous_out: (N, B, prev_dim) or None.
    params: dict from init_stacked_params (already transposed / split).
    Returns (trans_out, predict_out): (N, B, out_num), (N, B, type_num).
    """
    w1t, b1 = params["w1t"], params["b1"]
    w2at, b2 = params["w2at"], params["b2"]
    w3t, b3 = params["w3t"], params["b3"]
    w2bt = params["w2bt"]

    n_nodes, batch, feat = x.shape
    hidden1 = w1t.shape[-1]
    out_num = w2at.shape[-1]
    type_num = w3t.shape[-1]
    out_pad = _round_up(max(out_num + type_num, _LANE), _LANE)

    def node_spec(*tail):
        # Per-node block: squeeze the node axis, keep trailing dims whole
        # (BN needs the full batch resident; block dims == full array dims).
        return pl.BlockSpec((None,) + tail, lambda n: (n,) + (0,) * len(tail))

    has_prev = previous_out is not None
    if has_prev:
        prev_dim = previous_out.shape[-1]
        assert w2bt is not None and w2bt.shape[-2] == prev_dim
        kernel = _branch_kernel_with_prev
        operands = (x, previous_out, w1t, b1, w2at, w2bt, b2, w3t, b3)
        in_specs = [
            node_spec(batch, feat), node_spec(batch, prev_dim),
            node_spec(feat, hidden1), node_spec(1, hidden1),
            node_spec(hidden1, out_num), node_spec(prev_dim, out_num),
            node_spec(1, out_num),
            node_spec(out_num, type_num), node_spec(1, type_num),
        ]
    else:
        # hidden_num2 == hidden_num1 in this configuration.
        prev_dim = 0
        assert w2at.shape[-2] == hidden1
        kernel = _branch_kernel_no_prev
        operands = (x, w1t, b1, w2at, b2, w3t, b3)
        in_specs = [
            node_spec(batch, feat),
            node_spec(feat, hidden1), node_spec(1, hidden1),
            node_spec(hidden1, out_num), node_spec(1, out_num),
            node_spec(out_num, type_num), node_spec(1, type_num),
        ]

    # Advisory cost for XLA scheduling around the fused many-node call.
    flops_per_node = (2 * batch * (feat * hidden1
                                   + (hidden1 + prev_dim) * out_num
                                   + out_num * type_num)
                      + 10 * batch * out_num)
    transc_per_node = batch * (hidden1 + out_num + type_num) + out_num
    bytes_per_node = 4 * (batch * (feat + prev_dim + out_pad)
                          + feat * hidden1 + hidden1
                          + (hidden1 + prev_dim) * out_num + out_num
                          + out_num * type_num + type_num)

    slab = pl.pallas_call(
        kernel,
        grid=(n_nodes,),
        in_specs=in_specs,
        out_specs=node_spec(batch, out_pad),
        out_shape=jax.ShapeDtypeStruct((n_nodes, batch, out_pad), jnp.float32),
        compiler_params=pltpu.CompilerParams(
            dimension_semantics=("parallel",),
            vmem_limit_bytes=32 * 1024 * 1024),
        cost_estimate=pl.CostEstimate(
            flops=n_nodes * flops_per_node,
            transcendentals=n_nodes * transc_per_node,
            bytes_accessed=n_nodes * bytes_per_node),
    )(*operands)

    trans_out = slab[:, :, :out_num]
    predict_out = slab[:, :, out_num:out_num + type_num]
    return trans_out, predict_out


def init_stacked_params(key, n_nodes, feature_dim, hidden_num1, prev_dim,
                        out_num, type_num):
    """PyTorch-style uniform init for N stacked BranchNodes, stored pre-
    transposed / pre-split / pre-broadcast (no per-call reshapes)."""
    hidden_num2 = hidden_num1 + prev_dim
    ks = jax.random.split(key, 6)

    def uniform(k, shape, fan_in):
        bound = 1.0 / math.sqrt(fan_in)
        return jax.random.uniform(k, shape, jnp.float32, -bound, bound)

    # PyTorch Linear weights are (out, in); store transposed (in, out).
    w1 = uniform(ks[0], (n_nodes, hidden_num1, feature_dim), feature_dim)
    b1 = uniform(ks[1], (n_nodes, hidden_num1), feature_dim)
    w2 = uniform(ks[2], (n_nodes, out_num, hidden_num2), hidden_num2)
    b2 = uniform(ks[3], (n_nodes, out_num), hidden_num2)
    w3 = uniform(ks[4], (n_nodes, type_num, out_num), out_num)
    b3 = uniform(ks[5], (n_nodes, type_num), out_num)

    w1t = jnp.transpose(w1, (0, 2, 1))
    w2t = jnp.transpose(w2, (0, 2, 1))          # (N, hidden_num2, out_num)
    w3t = jnp.transpose(w3, (0, 2, 1))
    return {
        "w1t": w1t,
        "b1": b1[:, None, :],
        "w2at": w2t[:, :hidden_num1, :],
        "w2bt": w2t[:, hidden_num1:, :] if prev_dim > 0 else None,
        "b2": b2[:, None, :],
        "w3t": w3t,
        "b3": b3[:, None, :],
    }


def reference_forward(x, previous_out, params):
    """Pure-JAX reference mirroring the PyTorch forward (training-mode BN)."""
    trans_list, pred_list = [], []
    for n in range(x.shape[0]):
        h1 = jnp.tanh(x[n] @ params["w1t"][n] + params["b1"][n])
        z2 = h1 @ params["w2at"][n] + params["b2"][n]
        if previous_out is not None:
            z2 = z2 + previous_out[n] @ params["w2bt"][n]
        t2 = jnp.tanh(z2)
        mean = jnp.mean(t2, axis=0, keepdims=True)
        var = jnp.mean((t2 - mean) ** 2, axis=0, keepdims=True)
        trans = (t2 - mean) / jnp.sqrt(var + _BN_EPS)
        pred = jnp.tanh(trans @ params["w3t"][n] + params["b3"][n])
        trans_list.append(trans)
        pred_list.append(pred)
    return jnp.stack(trans_list), jnp.stack(pred_list)


if __name__ == "__main__":
    n_nodes = 4
    batch = 8
    feature_dim = 32
    hidden_num1 = 16
    prev_dim = 16          # hidden_num2 = hidden_num1 + prev_dim = 32
    out_num = 16
    type_num = 8

    key = jax.random.PRNGKey(0)
    k_x, k_prev, k_p1, k_p2 = jax.random.split(key, 4)

    x = jax.random.normal(k_x, (n_nodes, batch, feature_dim), jnp.float32)
    prev = jax.random.normal(k_prev, (n_nodes, batch, prev_dim), jnp.float32)

    # Case 1: with previous_out (split matmul over the concat).
    params = init_stacked_params(k_p1, n_nodes, feature_dim, hidden_num1,
                                 prev_dim, out_num, type_num)
    trans_out, predict_out = branch_nodes_forward(x, prev, params)
    jax.block_until_ready((trans_out, predict_out))
    ref_trans, ref_pred = reference_forward(x, prev, params)
    assert trans_out.shape == (n_nodes, batch, out_num)
    assert predict_out.shape == (n_nodes, batch, type_num)
    assert jnp.allclose(trans_out, ref_trans, atol=1e-4, rtol=1e-4)
    assert jnp.allclose(predict_out, ref_pred, atol=1e-4, rtol=1e-4)

    # Case 2: previous_out=None (specialized kernel, hidden_num2 == hidden_num1).
    params0 = init_stacked_params(k_p2, n_nodes, feature_dim, hidden_num1,
                                  0, out_num, type_num)
    trans0, pred0 = branch_nodes_forward(x, None, params0)
    jax.block_until_ready((trans0, pred0))
    ref_trans0, ref_pred0 = reference_forward(x, None, params0)
    assert jnp.allclose(trans0, ref_trans0, atol=1e-4, rtol=1e-4)
    assert jnp.allclose(pred0, ref_pred0, atol=1e-4, rtol=1e-4)

    print("KERNEL_OK")
</pallas_src>

<mosaic_0001>
module attributes {stable_mosaic.version = 11 : i64} {
  func.func @_branch_kernel_with_prev(%arg0: i32, %arg1: memref<1x8x32xf32, #tpu.memory_space<vmem>>, %arg2: memref<1x8x16xf32, #tpu.memory_space<vmem>>, %arg3: memref<1x32x16xf32, #tpu.memory_space<vmem>>, %arg4: memref<1x1x16xf32, #tpu.memory_space<vmem>>, %arg5: memref<1x16x16xf32, #tpu.memory_space<vmem>>, %arg6: memref<1x16x16xf32, #tpu.memory_space<vmem>>, %arg7: memref<1x1x16xf32, #tpu.memory_space<vmem>>, %arg8: memref<1x16x8xf32, #tpu.memory_space<vmem>>, %arg9: memref<1x1x8xf32, #tpu.memory_space<vmem>>, %arg10: memref<1x8x128xf32, #tpu.memory_space<vmem>>) attributes {dimension_semantics = [#tpu.dimension_semantics<parallel>], iteration_bounds = array<i64: 4>, scalar_prefetch = 0 : i64, scratch_operands = 0 : i64, tpu.core_type = #tpu.core_type<tc>, window_params = [{transform_indices = @transform_0, window_bounds = array<i64: 1, 8, 32>}, {transform_indices = @transform_1, window_bounds = array<i64: 1, 8, 16>}, {transform_indices = @transform_2, window_bounds = array<i64: 1, 32, 16>}, {transform_indices = @transform_3, window_bounds = array<i64: 1, 1, 16>}, {transform_indices = @transform_4, window_bounds = array<i64: 1, 16, 16>}, {transform_indices = @transform_5, window_bounds = array<i64: 1, 16, 16>}, {transform_indices = @transform_6, window_bounds = array<i64: 1, 1, 16>}, {transform_indices = @transform_7, window_bounds = array<i64: 1, 16, 8>}, {transform_indices = @transform_8, window_bounds = array<i64: 1, 1, 8>}, {transform_indices = @transform_9, window_bounds = array<i64: 1, 8, 128>}]} {
    %c0 = arith.constant 0 : index
    %c0_0 = arith.constant 0 : index
    %c0_1 = arith.constant 0 : index
    %0 = vector.load %arg1[%c0, %c0_0, %c0_1] : memref<1x8x32xf32, #tpu.memory_space<vmem>>, vector<1x8x32xf32>
    %1 = vector.shape_cast %0 : vector<1x8x32xf32> to vector<8x32xf32>
    %c0_2 = arith.constant 0 : index
    %c0_3 = arith.constant 0 : index
    %c0_4 = arith.constant 0 : index
    %2 = vector.load %arg3[%c0_2, %c0_3, %c0_4] : memref<1x32x16xf32, #tpu.memory_space<vmem>>, vector<1x32x16xf32>
    %3 = vector.shape_cast %2 : vector<1x32x16xf32> to vector<32x16xf32>
    %cst = arith.constant dense<0.000000e+00> : vector<8x16xf32>
    %4 = tpu.matmul %1, %3, %cst {dimension_numbers = #tpu.dot_dimension_numbers<[1], [0], [0], [1], [0, 0, 1, 1], [], []>} : vector<8x32xf32>, vector<32x16xf32>, vector<8x16xf32> -> vector<8x16xf32>
    %c0_5 = arith.constant 0 : index
    %c0_6 = arith.constant 0 : index
    %c0_7 = arith.constant 0 : index
    %5 = vector.load %arg4[%c0_5, %c0_6, %c0_7] : memref<1x1x16xf32, #tpu.memory_space<vmem>>, vector<1x1x16xf32>
    %6 = vector.shape_cast %5 : vector<1x1x16xf32> to vector<1x16xf32>
    %7 = vector.broadcast %6 : vector<1x16xf32> to vector<8x16xf32>
    %8 = arith.addf %4, %7 : vector<8x16xf32>
    %9 = math.tanh %8 : vector<8x16xf32>
    %c0_8 = arith.constant 0 : index
    %c0_9 = arith.constant 0 : index
    %c0_10 = arith.constant 0 : index
    %10 = vector.load %arg5[%c0_8, %c0_9, %c0_10] : memref<1x16x16xf32, #tpu.memory_space<vmem>>, vector<1x16x16xf32>
    %11 = vector.shape_cast %10 : vector<1x16x16xf32> to vector<16x16xf32>
    %cst_11 = arith.constant dense<0.000000e+00> : vector<8x16xf32>
    %12 = tpu.matmul %9, %11, %cst_11 {dimension_numbers = #tpu.dot_dimension_numbers<[1], [0], [0], [1], [0, 0, 1, 1], [], []>} : vector<8x16xf32>, vector<16x16xf32>, vector<8x16xf32> -> vector<8x16xf32>
    %c0_12 = arith.constant 0 : index
    %c0_13 = arith.constant 0 : index
    %c0_14 = arith.constant 0 : index
    %13 = vector.load %arg2[%c0_12, %c0_13, %c0_14] : memref<1x8x16xf32, #tpu.memory_space<vmem>>, vector<1x8x16xf32>
    %14 = vector.shape_cast %13 : vector<1x8x16xf32> to vector<8x16xf32>
    %c0_15 = arith.constant 0 : index
    %c0_16 = arith.constant 0 : index
    %c0_17 = arith.constant 0 : index
    %15 = vector.load %arg6[%c0_15, %c0_16, %c0_17] : memref<1x16x16xf32, #tpu.memory_space<vmem>>, vector<1x16x16xf32>
    %16 = vector.shape_cast %15 : vector<1x16x16xf32> to vector<16x16xf32>
    %cst_18 = arith.constant dense<0.000000e+00> : vector<8x16xf32>
    %17 = tpu.matmul %14, %16, %cst_18 {dimension_numbers = #tpu.dot_dimension_numbers<[1], [0], [0], [1], [0, 0, 1, 1], [], []>} : vector<8x16xf32>, vector<16x16xf32>, vector<8x16xf32> -> vector<8x16xf32>
    %18 = arith.addf %12, %17 : vector<8x16xf32>
    %c0_19 = arith.constant 0 : index
    %c0_20 = arith.constant 0 : index
    %c0_21 = arith.constant 0 : index
    %19 = vector.load %arg7[%c0_19, %c0_20, %c0_21] : memref<1x1x16xf32, #tpu.memory_space<vmem>>, vector<1x1x16xf32>
    %20 = vector.shape_cast %19 : vector<1x1x16xf32> to vector<1x16xf32>
    %21 = vector.broadcast %20 : vector<1x16xf32> to vector<8x16xf32>
    %22 = arith.addf %18, %21 : vector<8x16xf32>
    %23 = math.tanh %22 : vector<8x16xf32>
    %c0_22 = arith.constant 0 : index
    %c0_23 = arith.constant 0 : index
    %c0_24 = arith.constant 0 : index
    %24 = vector.load %arg8[%c0_22, %c0_23, %c0_24] : memref<1x16x8xf32, #tpu.memory_space<vmem>>, vector<1x16x8xf32>
    %25 = vector.shape_cast %24 : vector<1x16x8xf32> to vector<16x8xf32>
    %c0_25 = arith.constant 0 : index
    %c0_26 = arith.constant 0 : index
    %c0_27 = arith.constant 0 : index
    %26 = vector.load %arg9[%c0_25, %c0_26, %c0_27] : memref<1x1x8xf32, #tpu.memory_space<vmem>>, vector<1x1x8xf32>
    %27 = vector.shape_cast %26 : vector<1x1x8xf32> to vector<1x8xf32>
    %cst_28 = arith.constant dense<0.000000e+00> : vector<16xf32>
    %28 = vector.multi_reduction <add>, %23, %cst_28 [0] : vector<8x16xf32> to vector<16xf32>
    %29 = vector.shape_cast %28 : vector<16xf32> to vector<1x16xf32>
    %cst_29 = arith.constant 8.000000e+00 : f32
    %30 = vector.broadcast %cst_29 : f32 to vector<1x16xf32>
    %31 = arith.divf %29, %30 : vector<1x16xf32>
    %32 = arith.mulf %23, %23 : vector<8x16xf32>
    %cst_30 = arith.constant dense<0.000000e+00> : vector<16xf32>
    %33 = vector.multi_reduction <add>, %32, %cst_30 [0] : vector<8x16xf32> to vector<16xf32>
    %34 = vector.shape_cast %33 : vector<16xf32> to vector<1x16xf32>
    %cst_31 = arith.constant 8.000000e+00 : f32
    %35 = vector.broadcast %cst_31 : f32 to vector<1x16xf32>
    %36 = arith.divf %34, %35 : vector<1x16xf32>
    %37 = arith.mulf %31, %31 : vector<1x16xf32>
    %38 = arith.subf %36, %37 : vector<1x16xf32>
    %cst_32 = arith.constant 0.000000e+00 : f32
    %39 = vector.broadcast %cst_32 : f32 to vector<1x16xf32>
    %40 = arith.maximumf %38, %39 : vector<1x16xf32>
    %41 = vector.broadcast %31 : vector<1x16xf32> to vector<8x16xf32>
    %42 = arith.subf %23, %41 : vector<8x16xf32>
    %cst_33 = arith.constant 9.99999974E-6 : f32
    %43 = vector.broadcast %cst_33 : f32 to vector<1x16xf32>
    %44 = arith.addf %40, %43 : vector<1x16xf32>
    %45 = math.rsqrt %44 : vector<1x16xf32>
    %46 = vector.broadcast %45 : vector<1x16xf32> to vector<8x16xf32>
    %47 = arith.mulf %42, %46 : vector<8x16xf32>
    %cst_34 = arith.constant dense<0.000000e+00> : vector<8x8xf32>
    %48 = tpu.matmul %47, %25, %cst_34 {dimension_numbers = #tpu.dot_dimension_numbers<[1], [0], [0], [1], [0, 0, 1, 1], [], []>} : vector<8x16xf32>, vector<16x8xf32>, vector<8x8xf32> -> vector<8x8xf32>
    %49 = vector.broadcast %27 : vector<1x8xf32> to vector<8x8xf32>
    %50 = arith.addf %48, %49 : vector<8x8xf32>
    %51 = math.tanh %50 : vector<8x8xf32>
    %cst_35 = arith.constant 0.000000e+00 : f32
    %52 = vector.broadcast %cst_35 : f32 to vector<8x104xf32>
    %53 = tpu.concatenate %47, %51, %52 in 1 : vector<8x16xf32>, vector<8x8xf32>, vector<8x104xf32> -> vector<8x128xf32>
    %c0_36 = arith.constant 0 : index
    %c0_37 = arith.constant 0 : index
    %c0_38 = arith.constant 0 : index
    %54 = vector.load %arg10[%c0_36, %c0_37, %c0_38] : memref<1x8x128xf32, #tpu.memory_space<vmem>>, vector<1x8x128xf32>
    %55 = vector.shape_cast %54 : vector<1x8x128xf32> to vector<8x128xf32>
    %56 = vector.shape_cast %53 : vector<8x128xf32> to vector<1x8x128xf32>
    tpu.vector_store %arg10[%c0_36, %c0_37, %c0_38], %56 {strides = array<i32>} : memref<1x8x128xf32, #tpu.memory_space<vmem>>, vector<1x8x128xf32>,
    return
  }
  func.func @transform_0(%arg0: i32) -> (i32, i32, i32) {
    %c0_i32 = arith.constant 0 : i32
    %c0_i32_0 = arith.constant 0 : i32
    %c0_i32_1 = arith.constant 0 : i32
    return %arg0, %c0_i32, %c0_i32_0 : i32, i32, i32
  }
  func.func @transform_1(%arg0: i32) -> (i32, i32, i32) {
    %c0_i32 = arith.constant 0 : i32
    %c0_i32_0 = arith.constant 0 : i32
    %c0_i32_1 = arith.constant 0 : i32
    return %arg0, %c0_i32, %c0_i32_0 : i32, i32, i32
  }
  func.func @transform_2(%arg0: i32) -> (i32, i32, i32) {
    %c0_i32 = arith.constant 0 : i32
    %c0_i32_0 = arith.constant 0 : i32
    %c0_i32_1 = arith.constant 0 : i32
    return %arg0, %c0_i32, %c0_i32_0 : i32, i32, i32
  }
  func.func @transform_3(%arg0: i32) -> (i32, i32, i32) {
    %c0_i32 = arith.constant 0 : i32
    %c0_i32_0 = arith.constant 0 : i32
    %c0_i32_1 = arith.constant 0 : i32
    return %arg0, %c0_i32, %c0_i32_0 : i32, i32, i32
  }
  func.func @transform_4(%arg0: i32) -> (i32, i32, i32) {
    %c0_i32 = arith.constant 0 : i32
    %c0_i32_0 = arith.constant 0 : i32
    %c0_i32_1 = arith.constant 0 : i32
    return %arg0, %c0_i32, %c0_i32_0 : i32, i32, i32
  }
  func.func @transform_5(%arg0: i32) -> (i32, i32, i32) {
    %c0_i32 = arith.constant 0 : i32
    %c0_i32_0 = arith.constant 0 : i32
    %c0_i32_1 = arith.constant 0 : i32
    return %arg0, %c0_i32, %c0_i32_0 : i32, i32, i32
  }
  func.func @transform_6(%arg0: i32) -> (i32, i32, i32) {
    %c0_i32 = arith.constant 0 : i32
    %c0_i32_0 = arith.constant 0 : i32
    %c0_i32_1 = arith.constant 0 : i32
    return %arg0, %c0_i32, %c0_i32_0 : i32, i32, i32
  }
  func.func @transform_7(%arg0: i32) -> (i32, i32, i32) {
    %c0_i32 = arith.constant 0 : i32
    %c0_i32_0 = arith.constant 0 : i32
    %c0_i32_1 = arith.constant 0 : i32
    return %arg0, %c0_i32, %c0_i32_0 : i32, i32, i32
  }
  func.func @transform_8(%arg0: i32) -> (i32, i32, i32) {
    %c0_i32 = arith.constant 0 : i32
    %c0_i32_0 = arith.constant 0 : i32
    %c0_i32_1 = arith.constant 0 : i32
    return %arg0, %c0_i32, %c0_i32_0 : i32, i32, i32
  }
  func.func @transform_9(%arg0: i32) -> (i32, i32, i32) {
    %c0_i32 = arith.constant 0 : i32
    %c0_i32_0 = arith.constant 0 : i32
    %c0_i32_1 = arith.constant 0 : i32
    return %arg0, %c0_i32, %c0_i32_0 : i32, i32, i32
  }
}

</mosaic_0001>

<bundles_post_ra>
// kernel: tpu_custom_call.1
= control target key start
LH: loop header
LB: loop body
LE: loop exit
PB: predicated region body
PF: predicated region fallthrough
CT: control target
= control target key end

     0   :  { %14 = vsyncpa [#allocation3], 0  ;;  %s1394_s0 = inlined_call_operand.vmem [shape: f32[4,8,32], index: 0, kind: input, shape index: {}]   ;;  %s1395_s1 = inlined_call_operand.vmem [shape: f32[4,8,16], index: 1, kind: input, shape index: {}]   ;;  %s1396_s2 = inlined_call_operand.vmem [shape: f32[4,32,16], index: 2, kind: input, shape index: {}]   ;;  %s1397_s3 = inlined_call_operand.vmem [shape: f32[4,1,16], index: 3, kind: input, shape index: {}]   ;;  %s1398_s4 = inlined_call_operand.vmem [shape: f32[4,16,16], index: 4, kind: input, shape index: {}]   ;;  %s1399_s5 = inlined_call_operand.vmem [shape: f32[4,16,16], index: 5, kind: input, shape index: {}]   ;;  %s1400_s6 = inlined_call_operand.vmem [shape: f32[4,1,16], index: 6, kind: input, shape index: {}]   ;;  %s1401_s7 = inlined_call_operand.vmem [shape: f32[4,16,8], index: 7, kind: input, shape index: {}]   ;;  %s1402_s8 = inlined_call_operand.vmem [shape: f32[4,1,8], index: 8, kind: input, shape index: {}]   ;;  %s1403_s9 = inlined_call_operand.hbm [shape: f32[4,8,128], index: 9, kind: output, shape index: {}]  }
   0x1   :  { %16 = vsyncpa [#allocation3 + $0x1], 0  ;;  %s1252_s30 = smov 0   ;;  %s1254_s10 = smov 0  }
   0x2   :  { %s1256_s11 = smov 0   ;;  %s1258_s12 = smov 0  }
   0x3 LB: > { %s1273_s13 = sadd.s32 4294967295, %s1195_s12   ;;  %s991_s14 = sadd.s32 4294967294, %s1195_s12   ;;  %s1195_s12 = sphi %s1258_s12, %s1409_s12   ;;  %s1191_s11 = sphi %s1256_s11, %s1408_s11   ;;  %s1187_s10 = sphi %s1254_s10, %s1407_s10   ;;  %s1183_s30 = sphi %s1252_s30, %s1406_s30  }
   0x4   : > { %s1277_s15 = sadd.s32 1, %s1195_s12   ;;  %s263_s16 = sadd.s32 1, %s1191_s11 }
   0x5   : > { %s260_s17 = ssub.s32 %s1195_s12, %s1277_s15  ;;  %p273_p0 = scmp.ne.s32.totalorder %s1191_s11, %s1187_s10 }
   0x6   : > { %p261_p1 = scmp.eq.s32.totalorder %s260_s17, 0  ;;  %p274_p2 = scmp.eq.s32.totalorder %s1273_s13, 3 }
   0x7   : > { %p279_p3 = scmp.ne.s32.totalorder %s1187_s10, %s1183_s30  ;;  %p280_p4 = scmp.eq.s32.totalorder %s991_s14, 3 }
   0x8   : > { %s1288_s18 = scalar_select %p261_p1, %s1191_s11, %s263_s16  }
   0x9   : > { %p1290_p5 = por %p274_p2, %p273_p0  ;;  %p1294_p6 = por %p280_p4, %p279_p3 }
   0xa   : > { %p994_p7 = scmp.ge.s32.totalorder %s1195_s12, 1  ;;  %p362_p8 = scmp.lt.s32.totalorder %s1195_s12, 5 }
   0xc   : > { %p363_p9 = pnand %p994_p7, %p362_p8 }
   0xd   : > { %p430_p10 = scmp.lt.s32.totalorder (!%p363_p9), %s1273_s13, 3  ;;  %v1197_v0 = vmov (!%p363_p9), 0.0|0.0   ;;  %vm1198_vm0 = vmmov (!%p363_p9), 0   ;;  %v1199_v1 = vmov (!%p363_p9), 0.0   ;;  %vm479_vm1 = vcmask (!%p363_p9), 261120   ;;  %s1200_s17 = smov (!%p363_p9), 16  }
   0xe   : > { %366 = sbr.rel (%p363_p9) target bundleno = 879 (0x36f), region = 56  ;;  %1067 = vmatprep.subr.bf16.mxu0 (!%p363_p9), %v1197_v0  ;;  %1043 = vmatprep.mubr.msk.f32.mxu0 (!%p363_p9), %vm1198_vm0, %v1199_v1  ;;  %vm559_vm2 = vcmask (!%p363_p9), 130048   ;;  %s1014_s23 = sshll.u32 (!%p363_p9), %s1273_s13, 7  ;;  %vm828_vm3 = vcmask (!%p363_p9), 195584  }
   0xf   : > { %1073 = vmatprep.subr.bf16.mxu1 (!%p363_p9), %v1197_v0  ;;  %1050 = vmatprep.mubr.msk.f32.mxu1 (!%p363_p9), %vm1198_vm0, %v1199_v1 }
  0x15   : > { %s1303_s21 = scalar_select %p430_p10, %s1273_s13, 3 }
  0x17   : > { %s1017_s22 = sshll.u32 %s1303_s21, 5  ;;  %s996_s26 = sshll.u32 %s1303_s21, 3 }
  0x18   : > { %s442_s25 = scalar_lea.vmem %s1396_s2, %s1017_s22  ;;  %s433_s29 = scalar_lea.vmem %s1394_s0, %s996_s26 }
  0x19   : > { %v468_v2 = vld [vmem:[%s442_s25] sm:$0xff]  ;;  %v469_v3 = vld [vmem:[%s442_s25 + $0x8] sm:$0xff]  ;;  %v470_v4 = vld [vmem:[%s442_s25 + $0x10] sm:$0xff]  ;;  %s1018_s14 = sshll.u32 %s1303_s21, 4  ;;  %s458_s28 = scalar_lea.vmem %s1400_s6, %s1303_s21 }
  0x1a   : > { %v1068_v5 = vpack.c.bf16 %v469_v3, %v468_v2  ;;  %v471_v6 = vld [vmem:[%s442_s25 + $0x18] sm:$0xff]  ;;  %v467_v8 = vld [vmem:[%s433_s29] sm:$0xff]  ;;  %s455_s22 = scalar_lea.vmem %s1399_s5, %s1018_s14  ;;  %s450_s25 = scalar_lea.vmem %s1398_s4, %s1018_s14 }
  0x1b   : > { %v1071_v7 = vpack.c.bf16 %v471_v6, %v470_v4  ;;  %v557_v9 = vld [vmem:[%s455_s22] sm:$0xff]  ;;  %v558_v10 = vld [vmem:[%s455_s22 + $0x8] sm:$0xff]  ;;  %s437_s29 = scalar_lea.vmem %s1395_s1, %s996_s26  ;;  %s445_s22 = scalar_lea.vmem %s1397_s3, %s1303_s21 }
  0x1c   : > { %1069 = vmatpush3.bf16.msra.mxu0 %v1068_v5  ;;  %v1074_v11 = vpack.c.bf16 %v558_v10, %v557_v9  ;;  %v554_v12 = vld [vmem:[%s450_s25] sm:$0xff]  ;;  %v555_v13 = vld [vmem:[%s450_s25 + $0x8] sm:$0xff]  ;;  %s463_s24 = scalar_lea.vmem %s1401_s7, %s1018_s14  ;;  %s466_s16 = scalar_lea.vmem %s1402_s8, %s1303_s21 }
  0x1d   : > { %1070 = vmatprep.subr.bf16.mxu0 %v1197_v0  ;;  %v556_v14 = vld [vmem:[%s437_s29] sm:$0xff]  ;;  %v1077_v15 = vpack.c.bf16 %v555_v13, %v554_v12  ;;  %v716_v24 = vld [vmem:[%s463_s24 + $0x8] sm:$0xff]  ;;  %s1201_s29 = smov [#allocation2]  }
  0x1e   : > { %1075 = vmatpush3.bf16.msra.mxu1 %v1074_v11  ;;  %v1006_v16 = vld [vmem:[%s445_s22] ss:$0 sm:$0xff]  ;;  %s427_s22 = sand.u32 1, %s1187_s10  }
  0x1f   : > { %1076 = vmatprep.subr.bf16.mxu1 %v1197_v0  ;;  %v715_v23 = vld [vmem:[%s463_s24] sm:$0xff]  ;;  %s995_s26 = sshll.u32 %s427_s22, 3  ;;  %s832_s14 = scalar_lea.sflag [#allocation3], %s427_s22 }
  0x20   : > { %1072 = vmatpush3.bf16.msra.mxu0 %v1071_v7  ;;  %v1080_v25 = vpack.c.bf16 %v716_v24, %v715_v23  ;;  %v1010_v27 = vld [vmem:[%s458_s28] ss:$0 sm:$0xff]  ;;  %s429_s24 = scalar_lea.vmem [#allocation2], %s995_s26  ;;  %s1352_s28 = scalar_lea.hbm %s1403_s9, %s1014_s23 }
  0x21   : > { %1079 = vmatprep.subr.bf16.mxu0 %v1197_v0  ;;  %1051 = vmatmul.mubr.msk.f32.vlgmr.msra.gmra.mrb[0].mxu1 %vm559_vm2, %v556_v14  ;;  %v1011_v56 = vld [vmem:[%s466_s16] ss:$0 sm:$0xff]  ;;  %s845_s25 = sshll.u32 %s429_s24, 4  ;;  %s1137_s16 = sshll.u32 %s1201_s29, 4  ;;  %s1354_s25 = int_to_ptr.vmem [resolvable:$true] %s845_s25  ;;  %s1138_s16 = int_to_ptr.vmem [resolvable:$false] %s1137_s16 }
  0x22   : > { %1078 = vmatpush3.bf16.msra.mxu1 %v1077_v15  ;;  %1057 = vmatprep.mubr.msk.f32.mxu1 %vm1198_vm0, %v1199_v1  ;;  %s1133_s13 = scalar_lea.vmem %s1354_s25, 128  ;;  %p1140_p0 = scmp.lt.s32.totalorder %s1354_s25, %s1138_s16 }
  0x23   : > { %1044 = vmatmul.mubr.msk.f32.vlgmr.msra.gmra.mrb[0].mxu0 %vm479_vm1, %v467_v8  ;;  %p1134_p11 = scmp.ne.s32.totalorder %s1354_s25, %s1133_s13 }
  0x24   : > { %1064 = vmatprep.mubr.msk.f32.mxu0 %vm1198_vm0, %v1199_v1  ;;  %1081 = vmatpush3.bf16.msra.mxu0 %v1080_v25 }
  0x25   : > { %p1135_p12 = pnand %p1134_p11, %p1290_p5 }
  0x27   : > { %p1136_p13 = pneg %p1135_p12 }
  0xf4   : > { %v629_v21 = vpop.f32.mrb[0].mxu1 }
  0xf5   : > { %v1052_v22 = vpop.f32.mrb[1].mxu1 }
  0xf6   : > { %v549_v17 = vpop.f32.mrb[0].mxu0 }
  0xf7   : > { %v550_v18 = vadd.f32 %v1006_v16, %v549_v17  ;;  %v1045_v19 = vpop.f32.mrb[1].mxu0 }
  0xf9   : > { %1125 = vtanh.f32 %v550_v18 }
 0x103   : > { %v1126_v20 = vpop.eup %1125 }
 0x104   : > { %1058 = vmatmul.mubr.msk.f32.vlgmr.msra.gmra.mrb[2].mxu1 %vm559_vm2, %v1126_v20 }
 0x1d7   : > { %v702_v26 = vpop.f32.mrb[2].mxu1 }
 0x1d8   : > { %v703_v28 = vadd.f32 %v702_v26, %v629_v21  ;;  %v1059_v29 = vpop.f32.mrb[3].mxu1 }
 0x1da   : > { %v713_v30 = vadd.f32 %v1010_v27, %v703_v28 }
 0x1dc   : > { %1127 = vtanh.f32 %v713_v30 }
 0x1e6   : > { %v1128_v31 = vpop.eup %1127 }
 0x1e7   : > { %v727_v32 = vmul.f32 %v1128_v31, %v1128_v31  ;;  %v718_v33 = vsel %vm559_vm2, %v1128_v31, 0.0 }
 0x1e8   : > { %v719_v34 = vrot.slane %v718_v33, 4 }
 0x1e9   : > { %v728_v35 = vsel %vm559_vm2, %v727_v32, 0.0 }
 0x1ea   : > { %v720_v36 = vadd.f32 %v719_v34, %v718_v33  ;;  %v729_v37 = vrot.slane %v728_v35, 4 }
 0x1ec   : > { %v721_v38 = vrot.slane %v720_v36, 2  ;;  %v730_v39 = vadd.f32 %v729_v37, %v728_v35 }
 0x1ee   : > { %v722_v40 = vadd.f32 %v721_v38, %v720_v36  ;;  %v731_v41 = vrot.slane %v730_v39, 2 }
 0x1f0   : > { %v723_v42 = vrot.slane %v722_v40, 1  ;;  %v732_v43 = vadd.f32 %v731_v41, %v730_v39 }
 0x1f2   : > { %v724_v44 = vadd.f32 %v723_v42, %v722_v40  ;;  %v733_v45 = vrot.slane %v732_v43, 1 }
 0x1f4   : > { %v726_v46 = vmul.f32 0.125, %v724_v44  ;;  %v734_v47 = vadd.f32 %v733_v45, %v732_v43 }
 0x1f6   : > { %v735_v48 = vmul.f32 0.125, %v734_v47  ;;  %v736_v49 = vmul.f32 %v726_v46, %v726_v46  ;;  %v739_v53 = vsub.f32 %v1128_v31, %v726_v46 }
 0x1f8   : > { %v737_v50 = vsub.f32 %v735_v48, %v736_v49 }
 0x1fa   : > { %v738_v51 = vmax.f32 %v737_v50, 0.0 }
 0x1fc   : > { %v740_v52 = vadd.f32 1e-05, %v738_v51 }
 0x1fe   : > { %1129 = vrsqrt.f32 %v740_v52 }
 0x208   : > { %v1130_v54 = vpop.eup %1129 }
 0x209   : > { %v742_v55 = vmul.f32 %v1130_v54, %v739_v53 }
 0x20b   : > { %1065 = vmatmul.mubr.msk.f32.vlgmr.msra.gmra.mrb[2].mxu0 %vm559_vm2, %v742_v55 }
 0x2de   : > { %v818_v57 = vpop.f32.mrb[2].mxu0 }
 0x2df   : > { %v819_v58 = vadd.f32 %v1011_v56, %v818_v57  ;;  %v1066_v59 = vpop.f32.mrb[3].mxu0 }
 0x2e1   : > { %1131 = vtanh.f32 %v819_v58 }
 0x2eb   : > { %v1132_v60 = vpop.eup %1131 }
 0x2ec   : > { %824 = vrot.lane.b32.xlu0 %v1132_v60, %s1200_s17  ;;  %s1139_s17 = scalar_lea.vmem %s1138_s16, 256 }
 0x2ed   : > { %p1141_p1 = scmp.lt.s32.totalorder %s1139_s17, %s1133_s13 }
 0x2ef   : > { %p1142_p2 = por %p1141_p1, %p1140_p0 }
 0x2f1   : > { %p1143_p3 = pnand %p1142_p2, %p1136_p13 }
 0x35e   : > { %v825_v61 = vpop.permute.xlu0 %824 }
 0x35f   : > { %v827_v62 = vsel %vm559_vm2, %v742_v55, %v825_v61 }
 0x360   : > { %v829_v63 = vsel %vm828_vm3, %v827_v62, 0.0 }
 0x361   : > { %830 = vst [vmem:[%s429_s24] sm:$0xff] %v829_v63 }
 0x362   : > { %1146 = shalt.err (!%p1143_p3)
}
 0x363   : > { %s1147_s22 = scalar_lea.hbm %s1352_s28, 128  ;;  %s1151_s24 = scalar_lea.hbm %s1403_s9, 512 }
 0x364   : > { %p1148_p4 = scmp.ne.s32.totalorder %s1352_s28, %s1147_s22  ;;  %p1152_p9 = scmp.lt.u32.totalorder %s1352_s28, %s1403_s9 }
 0x365   : > { %p1153_p10 = scmp.lt.u32.totalorder %s1151_s24, %s1147_s22  ;;  %p1155_p12 = scmp.lt.u32.totalorder %s1147_s22, %s1352_s28 }
 0x366   : > { %p1149_p7 = pnand %p1148_p4, %p1290_p5 }
 0x367   : > { %p1154_p11 = por %p1153_p10, %p1152_p9 }
 0x368   : > { %p1150_p8 = pneg %p1149_p7 }
 0x369   : > { %p1156_p13 = por %p1155_p12, %p1154_p11 }
 0x36b   : > { %p1157_p0 = pnand %p1156_p13, %p1150_p8 }
 0x36d   : > { %1160 = shalt.err (!%p1157_p0)
}
 0x36e   : > { %1082 = dma.vmem_to_hbm [thread:$0]  (%p1290_p5), %s1354_s25, 128, %s1352_s28, %s832_s14  }
 0x36f PF: > { %p1088_p1 = scmp.ge.s32.totalorder %s1195_s12, 2  ;;  %s857_s13 = sand.u32 1, %s1183_s30  }
 0x370   : > { %s858_s29 = scalar_lea.sflag [#allocation3], %s857_s13 }
 0x371   : > { %p1085_p2 = pnand %p1088_p1, %p1294_p6 }
 0x373   : > { %1178 = dma.done.wait (!%p1085_p2), %s858_s29, 128  }
 0x374   : > { %1180 = vsyncadd (!%p1085_p2), %s858_s29, 4294967168  ;;  %p19_p3 = scmp.ge.s32.totalorder %s1277_s15, 6   ;;  %s1406_s30 = smov %s1187_s10 }
 0x375   : > { %s1407_s10 = smov %s1191_s11  ;;  %s1408_s11 = smov %s1288_s18 }
 0x376   : > { %s1409_s12 = smov %s1277_s15  ;;  %21 = sbr.rel (!%p19_p3) target bundleno = 3 (0x3), region = 115 }
 0x37d   :  { %863 = vsyncpa [#allocation3], 1 }
 0x37e   :  { %865 = vsyncpa [#allocation3 + $0x1], 1 }

</bundles_post_ra>
